<compile_context>
chip_gen: v5e
topology: v5e:2x2
jax: 0.10.0
libtpu: 0.0.40
codegen_flags: <defaults>
</compile_context>

<pallas_src>
import functools

import jax
import jax.numpy as jnp
from jax.experimental import pallas as pl
from jax.experimental.pallas import tpu as pltpu


def _scale_hardtanh_kernel(p_ref, x_ref, o_ref, *, compute_dtype):
    # p_ref: (tile_rows, 4) f32 VMEM — columns are [b1, b2, k1, k2] per row.
    # x_ref / o_ref: (tile_rows, tile_lanes) in the tensor's native dtype.
    p = p_ref[...].astype(compute_dtype)
    b1 = p[:, 0:1]
    b2 = p[:, 1:2]
    k1 = p[:, 2:3]
    k2 = p[:, 3:4]
    x = x_ref[...].astype(compute_dtype)
    xb = x + b1
    # xb*mask*k1 + xb*(1-mask)*k2 + b2  ==  xb * (k1 if xb > 0 else k2) + b2
    y = xb * jnp.where(xb > 0, k1, k2) + b2
    o_ref[...] = y.astype(o_ref.dtype)


def _round_up(a, b):
    return -(-a // b) * b


def _device_budgets():
    """(vmem_limit_bytes, target_block_bytes) scaled to the chip's VMEM capacity."""
    vmem_limit = 32 * 1024 * 1024       # safe on v7x (64 MiB/TC) and everywhere else
    target_block = 4 * 1024 * 1024
    try:
        cap = getattr(pltpu.get_tpu_info(), "vmem_capacity_bytes", None)
        if cap is not None and cap >= 100 * 1024 * 1024:   # v5e / v6e: 128 MiB VMEM
            vmem_limit = 64 * 1024 * 1024
            target_block = 8 * 1024 * 1024
    except Exception:
        pass
    return vmem_limit, target_block


def _is_v5e():
    try:
        kind = jax.devices()[0].device_kind.lower()
        return ("v5 lite" in kind) or ("v5e" in kind) or ("v5lite" in kind)
    except Exception:
        return False


def scale_hardtanh(x, b1, b2, k1, k2):
    """x: (N, C, H, W). b1/b2/k1/k2: (1, C, 1, 1) or scalar. Returns same shape/dtype."""
    N, C, H, W = x.shape
    nc, hw = N * C, H * W
    itemsize = jnp.dtype(x.dtype).itemsize
    sublane = 8 * max(1, 4 // itemsize)          # 8 (f32) / 16 (bf16) / 32 (i8, fp8)

    vmem_limit, target_block = _device_budgets()

    # Per-row param table: row r of the (N*C, H*W) view has channel r % C.
    def per_chan(p):
        return jnp.broadcast_to(jnp.asarray(p, jnp.float32).reshape(-1), (C,))

    p_c = jnp.stack([per_chan(b1), per_chan(b2), per_chan(k1), per_chan(k2)], axis=-1)  # (C, 4)
    p_rows = jnp.tile(p_c, (N, 1))                                                      # (N*C, 4), tiny

    # Metadata-only reshape (row-major merge of contiguous dims) — no HBM copy.
    x2d = x.reshape(nc, hw)

    pad_lanes = 0
    if hw % 128 == 0:
        # Lane-dense tiling along the H*W axis.
        lane_budget = max(128, (target_block // (sublane * itemsize)) // 128 * 128)
        tile_lanes = min(hw, lane_budget)
    else:
        # Ragged last dim: take the FULL last dim as the block (allowed by the
        # full-array-dim exception).  A few masked stores beat two extra HBM passes.
        tile_lanes = hw
        # Safety valve: if even a minimal full-lane block can't be double-buffered,
        # fall back to the (rare) pad + slice path.
        if 4 * sublane * hw * itemsize > (vmem_limit * 3) // 4:
            pad_lanes = _round_up(hw, 128) - hw
            x2d = jnp.pad(x2d, ((0, 0), (0, pad_lanes)))
            lane_budget = max(128, (target_block // (sublane * itemsize)) // 128 * 128)
            tile_lanes = min(hw + pad_lanes, lane_budget)
    lanes_total = hw + pad_lanes

    # Row tiling.  Cap tile_rows so the params block (padded to 128 lanes in VMEM,
    # i.e. tile_rows * 512 B per buffer) stays small and its DMA granularity sane.
    bytes_per_row = tile_lanes * itemsize
    row_budget = max(sublane, (target_block // bytes_per_row) // sublane * sublane)
    row_budget = min(row_budget, 2048)
    tile_rows = nc if row_budget >= nc else row_budget

    # Make sure there are multiple grid steps when possible so v7x's two
    # TensorCores both get work (free for a streaming op; no effect on v5e/v6e).
    n_lane_blocks = pl.cdiv(lanes_total, tile_lanes)
    n_row_blocks = pl.cdiv(nc, tile_rows)
    MIN_BLOCKS = 4
    if n_row_blocks * n_lane_blocks < MIN_BLOCKS:
        cand = _round_up(pl.cdiv(nc, pl.cdiv(MIN_BLOCKS, n_lane_blocks)), sublane)
        if sublane <= cand < tile_rows:
            tile_rows = cand
            n_row_blocks = pl.cdiv(nc, tile_rows)

    grid = (n_row_blocks, n_lane_blocks)

    # bf16 math natively on bf16-VPU chips (v6e/v7x); f32 in-vreg otherwise
    # (v5e has no bf16 VPU; f32/other dtypes always compute in f32).
    compute_dtype = x.dtype if (x.dtype == jnp.bfloat16 and not _is_v5e()) else jnp.float32

    cost = pl.CostEstimate(
        flops=5 * x.size,
        transcendentals=0,
        bytes_accessed=2 * x.size * itemsize + int(p_rows.size) * 4,
    )

    kernel = functools.partial(_scale_hardtanh_kernel, compute_dtype=compute_dtype)

    out2d = pl.pallas_call(
        kernel,
        out_shape=jax.ShapeDtypeStruct((nc, lanes_total), x.dtype),
        grid_spec=pltpu.PrefetchScalarGridSpec(
            num_scalar_prefetch=0,
            grid=grid,
            in_specs=[
                pl.BlockSpec((tile_rows, 4), lambda i, j: (i, 0)),            # params
                pl.BlockSpec((tile_rows, tile_lanes), lambda i, j: (i, j)),   # x
            ],
            out_specs=pl.BlockSpec((tile_rows, tile_lanes), lambda i, j: (i, j)),
        ),
        compiler_params=pltpu.CompilerParams(
            dimension_semantics=("parallel", "parallel"),
            vmem_limit_bytes=vmem_limit,
        ),
        cost_estimate=cost,
    )(p_rows, x2d)

    if pad_lanes:
        out2d = out2d[:, :hw]
    return out2d.reshape(N, C, H, W)


def scale_hardtanh_ref(x, b1, b2, k1, k2):
    xb = x + b1
    mask = (xb > 0).astype(x.dtype)
    return xb * mask * k1 + xb * (1.0 - mask) * k2 + b2


if __name__ == "__main__":
    key = jax.random.PRNGKey(0)
    kx, kb1, kb2, kk1, kk2, kx2 = jax.random.split(key, 6)

    # --- main shape (lane-aligned H*W) --------------------------------------
    N, C, H, W = 2, 4, 16, 16
    x = jax.random.normal(kx, (N, C, H, W), dtype=jnp.float32) * 3.0

    # Per-channel params (PyTorch shape (1, C, 1, 1)).  Random, deterministic
    # values so the per-channel path is actually exercised (the module's init
    # b=0, k1=1, k2=0.1 is identical across channels and would hide bugs).
    b1 = 0.5 * jax.random.normal(kb1, (1, C, 1, 1), dtype=jnp.float32)
    b2 = 0.5 * jax.random.normal(kb2, (1, C, 1, 1), dtype=jnp.float32)
    k1 = 1.0 + 0.1 * jax.random.normal(kk1, (1, C, 1, 1), dtype=jnp.float32)
    k2 = 0.1 + 0.01 * jax.random.normal(kk2, (1, C, 1, 1), dtype=jnp.float32)

    out = jax.block_until_ready(scale_hardtanh(x, b1, b2, k1, k2))
    ref = scale_hardtanh_ref(x, b1, b2, k1, k2)
    assert out.shape == x.shape and out.dtype == x.dtype
    assert jnp.allclose(out, ref, atol=1e-5, rtol=1e-5), float(jnp.max(jnp.abs(out - ref)))

    # --- ragged shape (H*W % 128 != 0): exercises the no-pad masked-store path
    N2, C2, H2, W2 = 2, 3, 5, 7
    x2 = jax.random.normal(kx2, (N2, C2, H2, W2), dtype=jnp.float32) * 3.0
    b1_2 = b1[:, :C2]
    b2_2 = b2[:, :C2]
    k1_2 = k1[:, :C2]
    k2_2 = k2[:, :C2]
    out2 = jax.block_until_ready(scale_hardtanh(x2, b1_2, b2_2, k1_2, k2_2))
    ref2 = scale_hardtanh_ref(x2, b1_2, b2_2, k1_2, k2_2)
    assert out2.shape == x2.shape and out2.dtype == x2.dtype
    assert jnp.allclose(out2, ref2, atol=1e-5, rtol=1e-5), float(jnp.max(jnp.abs(out2 - ref2)))

    print("KERNEL_OK")
</pallas_src>

<mosaic_0001>
module attributes {stable_mosaic.version = 11 : i64} {
  func.func @_scale_hardtanh_kernel(%arg0: i32, %arg1: i32, %arg2: memref<8x4xf32, #tpu.memory_space<vmem>>, %arg3: memref<8x256xf32, #tpu.memory_space<vmem>>, %arg4: memref<8x256xf32, #tpu.memory_space<vmem>>) attributes {dimension_semantics = [#tpu.dimension_semantics<parallel>, #tpu.dimension_semantics<parallel>], iteration_bounds = array<i64: 1, 1>, scalar_prefetch = 0 : i64, scratch_operands = 0 : i64, tpu.core_type = #tpu.core_type<tc>, window_params = [{transform_indices = @transform_0, window_bounds = array<i64: 8, 4>}, {transform_indices = @transform_1, window_bounds = array<i64: 8, 256>}, {transform_indices = @transform_2, window_bounds = array<i64: 8, 256>}]} {
    %c0 = arith.constant 0 : index
    %c0_0 = arith.constant 0 : index
    %0 = vector.load %arg2[%c0, %c0_0] : memref<8x4xf32, #tpu.memory_space<vmem>>, vector<8x4xf32>
    %1 = vector.extract_strided_slice %0 {offsets = [0, 0], sizes = [8, 1], strides = [1, 1]} : vector<8x4xf32> to vector<8x1xf32>
    %2 = vector.extract_strided_slice %0 {offsets = [0, 1], sizes = [8, 1], strides = [1, 1]} : vector<8x4xf32> to vector<8x1xf32>
    %3 = vector.extract_strided_slice %0 {offsets = [0, 2], sizes = [8, 1], strides = [1, 1]} : vector<8x4xf32> to vector<8x1xf32>
    %4 = vector.extract_strided_slice %0 {offsets = [0, 3], sizes = [8, 1], strides = [1, 1]} : vector<8x4xf32> to vector<8x1xf32>
    %c0_1 = arith.constant 0 : index
    %c0_2 = arith.constant 0 : index
    %5 = vector.load %arg3[%c0_1, %c0_2] : memref<8x256xf32, #tpu.memory_space<vmem>>, vector<8x256xf32>
    %6 = vector.broadcast %1 : vector<8x1xf32> to vector<8x256xf32>
    %7 = arith.addf %5, %6 : vector<8x256xf32>
    %cst = arith.constant 0.000000e+00 : f32
    %8 = vector.broadcast %cst : f32 to vector<8x256xf32>
    %9 = arith.cmpf ogt, %7, %8 : vector<8x256xf32>
    %10 = vector.shape_cast %3 : vector<8x1xf32> to vector<8x1xf32>
    %11 = vector.broadcast %10 : vector<8x1xf32> to vector<8x256xf32>
    %12 = vector.shape_cast %4 : vector<8x1xf32> to vector<8x1xf32>
    %13 = vector.broadcast %12 : vector<8x1xf32> to vector<8x256xf32>
    %14 = arith.select %9, %11, %13 : vector<8x256xi1>, vector<8x256xf32>
    %15 = arith.mulf %7, %14 : vector<8x256xf32>
    %16 = vector.broadcast %2 : vector<8x1xf32> to vector<8x256xf32>
    %17 = arith.addf %15, %16 : vector<8x256xf32>
    %c0_3 = arith.constant 0 : index
    %c0_4 = arith.constant 0 : index
    %18 = vector.load %arg4[%c0_3, %c0_4] : memref<8x256xf32, #tpu.memory_space<vmem>>, vector<8x256xf32>
    tpu.vector_store %arg4[%c0_3, %c0_4], %17 {strides = array<i32>} : memref<8x256xf32, #tpu.memory_space<vmem>>, vector<8x256xf32>,
    return
  }
  func.func @transform_0(%arg0: i32, %arg1: i32) -> (i32, i32) {
    %c0_i32 = arith.constant 0 : i32
    %c0_i32_0 = arith.constant 0 : i32
    return %arg0, %c0_i32 : i32, i32
  }
  func.func @transform_1(%arg0: i32, %arg1: i32) -> (i32, i32) {
    %c0_i32 = arith.constant 0 : i32
    return %arg0, %arg1 : i32, i32
  }
  func.func @transform_2(%arg0: i32, %arg1: i32) -> (i32, i32) {
    %c0_i32 = arith.constant 0 : i32
    return %arg0, %arg1 : i32, i32
  }
}

</mosaic_0001>

<bundles_post_ra>
// kernel: tpu_custom_call.1
= control target key start
LH: loop header
LB: loop body
LE: loop exit
PB: predicated region body
PF: predicated region fallthrough
CT: control target
= control target key end

     0   :  { %7 = vsyncpa [#allocation3], 0  ;;  %s168_s0 = inlined_call_operand.vmem [shape: f32[8,4], index: 0, kind: input, shape index: {}]   ;;  %s169_s1 = inlined_call_operand.hbm [shape: f32[8,256], index: 1, kind: input, shape index: {}]   ;;  %s170_s2 = inlined_call_operand.hbm [shape: f32[8,256], index: 2, kind: output, shape index: {}]  }
   0x1   :  { %8 = vsyncpa [#allocation4], 0  ;;  %s16_s11 = sshll.u32 %s169_s1, 4  ;;  %s138_s12 = smov [#allocation2]   ;;  %s17_s11 = int_to_ptr.hbm [resolvable:$true] %s16_s11 }
   0x2   :  { %s18_s13 = sshll.u32 %s138_s12, 4  ;;  %s19_s13 = int_to_ptr.vmem [resolvable:$true] %s18_s13 }
   0x3   :  { %21 = dma.hbm_to_vmem [thread:$0]  %s17_s11, 256, %s19_s13, [#allocation3]  }
   0x4   :  { %134 = dma.done.wait [#allocation3], 256  }
   0x5   :  { %135 = vsyncadd [#allocation3], 4294967040  ;;  %v139_v0 = vmov 0   ;;  %v140_v1 = vmov 3   ;;  %v26_v2 = vld [vmem:[%s168_s0] sm:$0xff]  ;;  %v141_v3 = vmov 2  }
   0x6   :  { %81 = vset.pattern.permute.xlu0 %v139_v0  ;;  %83 = vset.pattern.permute.xlu1 %v140_v1  ;;  %v142_v4 = vmov 1   ;;  %v27_v7 = vld [vmem:[#allocation2] sm:$0xff]  ;;  %v28_v8 = vld [vmem:[#allocation2 + $0x8] sm:$0xff]  ;;  %s143_s0 = smov [#allocation5]   ;;  %s65_s18 = sshll.u32 %s170_s2, 4  ;;  %s66_s18 = int_to_ptr.hbm [resolvable:$true] %s65_s18 }
   0x7   :  { %31 = vperm.xlu0 %81, %v26_v2   ;;  %43 = vperm.xlu1 %83, %v26_v2   ;;  %s63_s1 = sshll.u32 %s143_s0, 4  ;;  %s64_s1 = int_to_ptr.vmem [resolvable:$true] %s63_s1 }
   0xf   :  { %82 = vset.pattern.permute.xlu0 %v141_v3  ;;  %84 = vset.pattern.permute.xlu1 %v142_v4 }
  0x10   :  { %39 = vperm.xlu0 %82, %v26_v2   ;;  %51 = vperm.xlu1 %84, %v26_v2  }
  0x18   :  { %85 = vset.pattern.permute.xlu0 %v142_v4 }
  0x79   :  { %v32_v5 = vpop.permute.xlu0 %31  ;;  %v44_v6 = vpop.permute.xlu1 %43 }
  0x7a   :  { %v34_v9 = vadd.f32 %v32_v5, %v27_v7  ;;  %v35_v10 = vadd.f32 %v32_v5, %v28_v8 }
  0x7c   :  { %vm36_vm0 = vcmp.gt.f32.partialorder %v34_v9, 0.0  ;;  %vm37_vm1 = vcmp.gt.f32.partialorder %v35_v10, 0.0 }
  0x82   :  { %v40_v11 = vpop.permute.xlu0 %39  ;;  %v52_v14 = vpop.permute.xlu1 %51 }
  0x83   :  { %v46_v12 = vsel %vm36_vm0, %v40_v11, %v44_v6  ;;  %v47_v13 = vsel %vm37_vm1, %v40_v11, %v44_v6 }
  0x84   :  { %v48_v15 = vmul.f32 %v46_v12, %v34_v9  ;;  %v49_v16 = vmul.f32 %v47_v13, %v35_v10 }
  0x86   :  { %v54_v17 = vadd.f32 %v52_v14, %v48_v15  ;;  %v55_v18 = vadd.f32 %v52_v14, %v49_v16 }
  0x88   :  { %56 = vst [vmem:[#allocation5] sm:$0xff] %v54_v17 }
  0x89   :  { %57 = vst [vmem:[#allocation5 + $0x8] sm:$0xff] %v55_v18 }
  0x8a   :  { %68 = dma.vmem_to_hbm [thread:$0]  %s64_s1, 256, %s66_s18, [#allocation4]  }
  0x8b   :  { %136 = dma.done.wait [#allocation4], 256  }
  0x8c   :  { %137 = vsyncadd [#allocation4], 4294967040 }
  0x8d   :  { %73 = vsyncpa [#allocation3], 1 }
  0x8e   :  { %74 = vsyncpa [#allocation4], 1 }

</bundles_post_ra>
